<compile_context>
chip_gen: v7x
topology: tpu7x:2x2x1
jax: 0.10.0
libtpu: 0.0.40
codegen_flags: <defaults>
</compile_context>

<pallas_src>
import jax
import jax.numpy as jnp
from jax.experimental import pallas as pl
from jax.experimental.pallas import tpu as pltpu

# ---------------- small synthetic config ----------------
CONV_DIM = 128      # config.conv_dim[-1]
HIDDEN = 128        # config.hidden_size
LN_EPS = 1e-5       # config.layer_norm_eps
BATCH = 2
SEQ = 16


# ---------------- Pallas kernel ----------------
def _feature_projection_kernel(x_ref, ln_g_ref, ln_b_ref, w_ref, b_ref,
                               proj_ref, norm_ref):
    x = x_ref[...]                                            # (TM, C) f32

    # LayerNorm over the feature dim (biased variance, like torch.nn.LayerNorm)
    mu = jnp.mean(x, axis=-1, keepdims=True)
    var = jnp.mean((x - mu) ** 2, axis=-1, keepdims=True)
    normed = (x - mu) * jax.lax.rsqrt(var + LN_EPS)
    normed = normed * ln_g_ref[...] + ln_b_ref[...]
    norm_ref[...] = normed

    # Projection: one lane-dense MXU matmul, f32 accumulation.
    proj_ref[...] = (
        jnp.dot(normed, w_ref[...], preferred_element_type=jnp.float32)
        + b_ref[...]
    )
    # Dropout(feat_proj_dropout) is identity in eval mode.


# ---------------- wrapper ----------------
def wavlm_feature_projection(hidden_states, params, *, row_tile=256):
    B, T, C = hidden_states.shape
    H = params["proj_w"].shape[1]
    N = B * T

    x2d = hidden_states.reshape(N, C).astype(jnp.float32)

    # Row tile: multiple of 8 sublanes; at demo shapes this collapses the
    # whole batch into a single grid step (no per-step overhead on v5e/v6e).
    tm = min(row_tile, max(8, -(-N // 8) * 8))
    n_pad = -(-N // tm) * tm
    if n_pad != N:
        x2d = jnp.pad(x2d, ((0, n_pad - N), (0, 0)))

    grid = (n_pad // tm,)

    # NOTE: weight/bias index maps are constant (no re-DMA across steps). At
    # real WavLM sizes mark them pipeline_mode=pl.Buffered(1) to avoid
    # double-buffered weight VMEM; irrelevant here (grid has one step).
    in_specs = [
        pl.BlockSpec((tm, C), lambda i: (i, 0)),     # input rows
        pl.BlockSpec((1, C), lambda i: (0, 0)),      # LayerNorm gamma
        pl.BlockSpec((1, C), lambda i: (0, 0)),      # LayerNorm beta
        pl.BlockSpec((C, H), lambda i: (0, 0)),      # projection weight (in, out)
        pl.BlockSpec((1, H), lambda i: (0, 0)),      # projection bias
    ]
    out_specs = [
        pl.BlockSpec((tm, H), lambda i: (i, 0)),     # projected hidden states
        pl.BlockSpec((tm, C), lambda i: (i, 0)),     # layer-normed hidden states
    ]

    proj, norm = pl.pallas_call(
        _feature_projection_kernel,
        out_shape=(jax.ShapeDtypeStruct((n_pad, H), jnp.float32),
                   jax.ShapeDtypeStruct((n_pad, C), jnp.float32)),
        grid_spec=pltpu.PrefetchScalarGridSpec(
            num_scalar_prefetch=0,
            grid=grid,
            in_specs=in_specs,
            out_specs=out_specs,
        ),
        compiler_params=pltpu.CompilerParams(
            dimension_semantics=("parallel",)),
    )(x2d, params["ln_g"], params["ln_b"], params["proj_w"], params["proj_b"])

    proj = proj[:N].reshape(B, T, H)
    norm = norm[:N].reshape(B, T, C)
    return proj, norm


# ---------------- pure-JAX reference (for correctness check) ----------------
def _reference(hidden_states, params):
    x = hidden_states.astype(jnp.float32)
    mu = jnp.mean(x, axis=-1, keepdims=True)
    var = jnp.mean((x - mu) ** 2, axis=-1, keepdims=True)
    normed = (x - mu) * jax.lax.rsqrt(var + LN_EPS)
    normed = normed * params["ln_g"][0] + params["ln_b"][0]
    proj = normed @ params["proj_w"] + params["proj_b"][0]
    return proj, normed


# ---------------- deterministic parameter init ----------------
def init_params(key):
    k_g, k_b, k_w, k_pb = jax.random.split(key, 4)
    s = 0.02
    return {
        # non-trivial gamma/beta so the LayerNorm affine path is exercised
        "ln_g": 1.0 + s * jax.random.normal(k_g, (1, CONV_DIM), jnp.float32),
        "ln_b": s * jax.random.normal(k_b, (1, CONV_DIM), jnp.float32),
        # projection stored as (in, out) so y = x @ W + b
        "proj_w": s * jax.random.normal(k_w, (CONV_DIM, HIDDEN), jnp.float32),
        "proj_b": s * jax.random.normal(k_pb, (1, HIDDEN), jnp.float32),
    }


if __name__ == "__main__":
    key = jax.random.PRNGKey(0)
    pkey, xkey = jax.random.split(key)
    params = init_params(pkey)
    hidden_states = jax.random.normal(xkey, (BATCH, SEQ, CONV_DIM), jnp.float32)

    proj, norm = wavlm_feature_projection(hidden_states, params)
    proj = jax.block_until_ready(proj)
    norm = jax.block_until_ready(norm)

    assert proj.shape == (BATCH, SEQ, HIDDEN)
    assert norm.shape == (BATCH, SEQ, CONV_DIM)
    assert bool(jnp.all(jnp.isfinite(proj)))
    assert bool(jnp.all(jnp.isfinite(norm)))

    ref_proj, ref_norm = _reference(hidden_states, params)
    assert bool(jnp.allclose(proj, ref_proj, rtol=1e-4, atol=1e-4))
    assert bool(jnp.allclose(norm, ref_norm, rtol=1e-4, atol=1e-4))

    print("KERNEL_OK")
</pallas_src>

<mosaic_0001>
module attributes {stable_mosaic.version = 11 : i64} {
  func.func @_feature_projection_kernel(%arg0: i32, %arg1: memref<32x128xf32, #tpu.memory_space<vmem>>, %arg2: memref<1x128xf32, #tpu.memory_space<vmem>>, %arg3: memref<1x128xf32, #tpu.memory_space<vmem>>, %arg4: memref<128x128xf32, #tpu.memory_space<vmem>>, %arg5: memref<1x128xf32, #tpu.memory_space<vmem>>, %arg6: memref<32x128xf32, #tpu.memory_space<vmem>>, %arg7: memref<32x128xf32, #tpu.memory_space<vmem>>) attributes {dimension_semantics = [#tpu.dimension_semantics<parallel>], iteration_bounds = array<i64: 1>, scalar_prefetch = 0 : i64, scratch_operands = 0 : i64, tpu.core_type = #tpu.core_type<tc>, window_params = [{transform_indices = @transform_0, window_bounds = array<i64: 32, 128>}, {pipeline_mode = #tpu.pipeline_mode<synchronous>, transform_indices = @transform_1, window_bounds = array<i64: 1, 128>}, {pipeline_mode = #tpu.pipeline_mode<synchronous>, transform_indices = @transform_2, window_bounds = array<i64: 1, 128>}, {pipeline_mode = #tpu.pipeline_mode<synchronous>, transform_indices = @transform_3, window_bounds = array<i64: 128, 128>}, {pipeline_mode = #tpu.pipeline_mode<synchronous>, transform_indices = @transform_4, window_bounds = array<i64: 1, 128>}, {transform_indices = @transform_5, window_bounds = array<i64: 32, 128>}, {transform_indices = @transform_6, window_bounds = array<i64: 32, 128>}]} {
    %c0 = arith.constant 0 : index
    %c0_0 = arith.constant 0 : index
    %0 = vector.load %arg1[%c0, %c0_0] : memref<32x128xf32, #tpu.memory_space<vmem>>, vector<32x128xf32>
    %cst = arith.constant dense<0.000000e+00> : vector<32xf32>
    %1 = vector.multi_reduction <add>, %0, %cst [1] : vector<32x128xf32> to vector<32xf32>
    %2 = vector.shape_cast %1 : vector<32xf32> to vector<32x1xf32>
    %cst_1 = arith.constant 1.280000e+02 : f32
    %3 = vector.broadcast %cst_1 : f32 to vector<32x1xf32>
    %4 = arith.divf %2, %3 : vector<32x1xf32>
    %5 = vector.broadcast %4 : vector<32x1xf32> to vector<32x128xf32>
    %6 = arith.subf %0, %5 : vector<32x128xf32>
    %7 = arith.mulf %6, %6 : vector<32x128xf32>
    %cst_2 = arith.constant dense<0.000000e+00> : vector<32xf32>
    %8 = vector.multi_reduction <add>, %7, %cst_2 [1] : vector<32x128xf32> to vector<32xf32>
    %9 = vector.shape_cast %8 : vector<32xf32> to vector<32x1xf32>
    %cst_3 = arith.constant 1.280000e+02 : f32
    %10 = vector.broadcast %cst_3 : f32 to vector<32x1xf32>
    %11 = arith.divf %9, %10 : vector<32x1xf32>
    %12 = vector.broadcast %4 : vector<32x1xf32> to vector<32x128xf32>
    %13 = arith.subf %0, %12 : vector<32x128xf32>
    %cst_4 = arith.constant 9.99999974E-6 : f32
    %14 = vector.broadcast %cst_4 : f32 to vector<32x1xf32>
    %15 = arith.addf %11, %14 : vector<32x1xf32>
    %16 = math.rsqrt %15 : vector<32x1xf32>
    %17 = vector.broadcast %16 : vector<32x1xf32> to vector<32x128xf32>
    %18 = arith.mulf %13, %17 : vector<32x128xf32>
    %c0_5 = arith.constant 0 : index
    %c0_6 = arith.constant 0 : index
    %19 = vector.load %arg2[%c0_5, %c0_6] : memref<1x128xf32, #tpu.memory_space<vmem>>, vector<1x128xf32>
    %20 = vector.broadcast %19 : vector<1x128xf32> to vector<32x128xf32>
    %21 = arith.mulf %18, %20 : vector<32x128xf32>
    %c0_7 = arith.constant 0 : index
    %c0_8 = arith.constant 0 : index
    %22 = vector.load %arg3[%c0_7, %c0_8] : memref<1x128xf32, #tpu.memory_space<vmem>>, vector<1x128xf32>
    %23 = vector.broadcast %22 : vector<1x128xf32> to vector<32x128xf32>
    %24 = arith.addf %21, %23 : vector<32x128xf32>
    %c0_9 = arith.constant 0 : index
    %c0_10 = arith.constant 0 : index
    %25 = vector.load %arg7[%c0_9, %c0_10] : memref<32x128xf32, #tpu.memory_space<vmem>>, vector<32x128xf32>
    tpu.vector_store %arg7[%c0_9, %c0_10], %24 {strides = array<i32>} : memref<32x128xf32, #tpu.memory_space<vmem>>, vector<32x128xf32>,
    %c0_11 = arith.constant 0 : index
    %c0_12 = arith.constant 0 : index
    %26 = vector.load %arg4[%c0_11, %c0_12] : memref<128x128xf32, #tpu.memory_space<vmem>>, vector<128x128xf32>
    %cst_13 = arith.constant dense<0.000000e+00> : vector<32x128xf32>
    %27 = tpu.matmul %24, %26, %cst_13 {dimension_numbers = #tpu.dot_dimension_numbers<[1], [0], [0], [1], [0, 0, 1, 1], [], []>} : vector<32x128xf32>, vector<128x128xf32>, vector<32x128xf32> -> vector<32x128xf32>
    %c0_14 = arith.constant 0 : index
    %c0_15 = arith.constant 0 : index
    %28 = vector.load %arg5[%c0_14, %c0_15] : memref<1x128xf32, #tpu.memory_space<vmem>>, vector<1x128xf32>
    %29 = vector.broadcast %28 : vector<1x128xf32> to vector<32x128xf32>
    %30 = arith.addf %27, %29 : vector<32x128xf32>
    %c0_16 = arith.constant 0 : index
    %c0_17 = arith.constant 0 : index
    %31 = vector.load %arg6[%c0_16, %c0_17] : memref<32x128xf32, #tpu.memory_space<vmem>>, vector<32x128xf32>
    tpu.vector_store %arg6[%c0_16, %c0_17], %30 {strides = array<i32>} : memref<32x128xf32, #tpu.memory_space<vmem>>, vector<32x128xf32>,
    return
  }
  func.func @transform_0(%arg0: i32) -> (i32, i32) {
    %c0_i32 = arith.constant 0 : i32
    %c0_i32_0 = arith.constant 0 : i32
    return %arg0, %c0_i32 : i32, i32
  }
  func.func @transform_1(%arg0: i32) -> (i32, i32) {
    %c0_i32 = arith.constant 0 : i32
    %c0_i32_0 = arith.constant 0 : i32
    %c0_i32_1 = arith.constant 0 : i32
    return %c0_i32, %c0_i32_0 : i32, i32
  }
  func.func @transform_2(%arg0: i32) -> (i32, i32) {
    %c0_i32 = arith.constant 0 : i32
    %c0_i32_0 = arith.constant 0 : i32
    %c0_i32_1 = arith.constant 0 : i32
    return %c0_i32, %c0_i32_0 : i32, i32
  }
  func.func @transform_3(%arg0: i32) -> (i32, i32) {
    %c0_i32 = arith.constant 0 : i32
    %c0_i32_0 = arith.constant 0 : i32
    %c0_i32_1 = arith.constant 0 : i32
    return %c0_i32, %c0_i32_0 : i32, i32
  }
  func.func @transform_4(%arg0: i32) -> (i32, i32) {
    %c0_i32 = arith.constant 0 : i32
    %c0_i32_0 = arith.constant 0 : i32
    %c0_i32_1 = arith.constant 0 : i32
    return %c0_i32, %c0_i32_0 : i32, i32
  }
  func.func @transform_5(%arg0: i32) -> (i32, i32) {
    %c0_i32 = arith.constant 0 : i32
    %c0_i32_0 = arith.constant 0 : i32
    return %arg0, %c0_i32 : i32, i32
  }
  func.func @transform_6(%arg0: i32) -> (i32, i32) {
    %c0_i32 = arith.constant 0 : i32
    %c0_i32_0 = arith.constant 0 : i32
    return %arg0, %c0_i32 : i32, i32
  }
}

</mosaic_0001>

<bundles_post_ra>
// kernel: tpu_custom_call.1
= control target key start
LH: loop header
LB: loop body
LE: loop exit
PB: predicated region body
PF: predicated region fallthrough
CT: control target
= control target key end

     0   :  { %12 = vsyncpa [#allocation3], 0  ;;  %s622_s0 = inlined_call_operand.hbm [shape: f32[32,128], index: 0, kind: input, shape index: {}]   ;;  %s623_s1 = inlined_call_operand.vmem [shape: f32[1,128], index: 1, kind: input, shape index: {}]   ;;  %s624_s2 = inlined_call_operand.vmem [shape: f32[1,128], index: 2, kind: input, shape index: {}]   ;;  %s625_s3 = inlined_call_operand.hbm [shape: f32[128,128], index: 3, kind: input, shape index: {}]   ;;  %s626_s4 = inlined_call_operand.vmem [shape: f32[1,128], index: 4, kind: input, shape index: {}]   ;;  %s627_s5 = inlined_call_operand.hbm [shape: f32[32,128], index: 5, kind: output, shape index: {0}]   ;;  %s628_s6 = inlined_call_operand.hbm [shape: f32[32,128], index: 6, kind: output, shape index: {1}]  }
   0x1   :  { %13 = vsyncpa [#allocation6], 0 }
   0x2   :  { %14 = vsyncpa [#allocation4], 0 }
   0x3   :  { %15 = vsyncpa [#allocation9], 0  ;;  %s492_s21 = smov [#allocation2]   ;;  %s396_s25 = scalar_lea.hbm %s622_s0, 512 }
   0x4   :  { %s21_s22 = sshll.u32 %s492_s21, 4  ;;  %p397_p0 = scmp.ne.s32.totalorder %s622_s0, %s396_s25  ;;  %s22_s22 = int_to_ptr.vmem [resolvable:$true] %s21_s22 }
   0x5   :  { %p400_p1 = scmp.lt.u32.totalorder %s396_s25, %s622_s0 }
   0x7   :  { %p402_p2 = pnand %p400_p1, %p397_p0 }
   0x9   :  { %405 = shalt.err (!%p402_p2)
}
   0xa   :  { %s406_s30 = scalar_lea.vmem %s22_s22, 512  ;;  %p411_p4 = scmp.lt.s32.totalorder %s22_s22, %s22_s22 }
   0xb   :  { %p407_p3 = scmp.ne.s32.totalorder %s22_s22, %s406_s30  ;;  %p412_p5 = scmp.lt.s32.totalorder %s406_s30, %s406_s30 }
   0xd   :  { %p413_p6 = por %p412_p5, %p411_p4 }
   0xf   :  { %p414_p7 = pnand %p413_p6, %p407_p3 }
  0x11   :  { %417 = shalt.err (!%p414_p7)
}
  0x12   :  { %s493_s7 = smov 128   ;;  %s494_s8 = smov 8  }
  0x13   :  { %27 = dma.hbm_to_vmem [thread:$0]  %s622_s0, 512, %s22_s22, [#allocation3], %s493_s7, %s493_s7, %s494_s8  }
  0x14   :  { %s495_s11 = smov [#allocation5]   ;;  %s418_s15 = scalar_lea.hbm %s625_s3, 2048 }
  0x15   :  { %s37_s12 = sshll.u32 %s495_s11, 4  ;;  %p419_p8 = scmp.ne.s32.totalorder %s625_s3, %s418_s15  ;;  %s38_s12 = int_to_ptr.vmem [resolvable:$true] %s37_s12 }
  0x16   :  { %p422_p9 = scmp.lt.u32.totalorder %s418_s15, %s625_s3 }
  0x18   :  { %p424_p10 = pnand %p422_p9, %p419_p8 }
  0x1a   :  { %427 = shalt.err (!%p424_p10)
}
  0x1b   :  { %s428_s20 = scalar_lea.vmem %s38_s12, 2048  ;;  %p433_p12 = scmp.lt.s32.totalorder %s38_s12, %s38_s12 }
  0x1c   :  { %p429_p11 = scmp.ne.s32.totalorder %s38_s12, %s428_s20  ;;  %p434_p13 = scmp.lt.s32.totalorder %s428_s20, %s428_s20 }
  0x1e   :  { %p435_p0 = por %p434_p13, %p433_p12 }
  0x20   :  { %p436_p1 = pnand %p435_p0, %p429_p11 }
  0x22   :  { %439 = shalt.err (!%p436_p1)
}
  0x23   :  { %43 = dma.hbm_to_vmem [thread:$0]  %s625_s3, 2048, %s38_s12, [#allocation6], %s493_s7, %s493_s7, %s494_s8  }
  0x24   :  { %484 = dma.done.wait [#allocation3], 512  }
  0x25   :  { %485 = vsyncadd [#allocation3], 4294966784 }
  0x26   :  { %486 = dma.done.wait [#allocation6], 2048  }
  0x27   :  { %487 = vsyncadd [#allocation6], 4294965248  ;;  %v52_v0 = vld [vmem:[#allocation2] sm:$0xff]  ;;  %v53_v1 = vld [vmem:[#allocation2 + $0x8] sm:$0xff] }
  0x28   :  { %56 = vadd.xlane.f32.xlu0 %v52_v0  ;;  %58 = vadd.xlane.f32.xlu1 %v53_v1  ;;  %v54_v2 = vld [vmem:[#allocation2 + $0x10] sm:$0xff]  ;;  %v55_v3 = vld [vmem:[#allocation2 + $0x18] sm:$0xff]  ;;  %v127_v4 = vld [vmem:[#allocation5] sm:$0xff] }
  0x29   :  { %v128_v5 = vld [vmem:[#allocation5 + $0x8] sm:$0xff]  ;;  %v129_v6 = vld [vmem:[#allocation5 + $0x10] sm:$0xff]  ;;  %v130_v8 = vld [vmem:[#allocation5 + $0x18] sm:$0xff] }
  0x2a   :  { %v334_v7 = vpack.c.bf16 %v128_v5, %v127_v4  ;;  %v338_v9 = vpack.c.bf16 %v130_v8, %v129_v6  ;;  %v131_v26 = vld [vmem:[#allocation5 + $0x20] sm:$0xff]  ;;  %v132_v27 = vld [vmem:[#allocation5 + $0x28] sm:$0xff]  ;;  %v133_v29 = vld [vmem:[#allocation5 + $0x30] sm:$0xff] }
  0x2b   :  { %v342_v28 = vpack.c.bf16 %v132_v27, %v131_v26  ;;  %v134_v30 = vld [vmem:[#allocation5 + $0x38] sm:$0xff]  ;;  %v135_v32 = vld [vmem:[#allocation5 + $0x40] sm:$0xff]  ;;  %v136_v33 = vld [vmem:[#allocation5 + $0x48] sm:$0xff] }
  0x2c   :  { %60 = vadd.xlane.f32.xlu0 %v54_v2  ;;  %62 = vadd.xlane.f32.xlu1 %v55_v3  ;;  %v346_v31 = vpack.c.bf16 %v134_v30, %v133_v29  ;;  %v350_v34 = vpack.c.bf16 %v136_v33, %v135_v32  ;;  %v137_v35 = vld [vmem:[#allocation5 + $0x50] sm:$0xff]  ;;  %v138_v36 = vld [vmem:[#allocation5 + $0x58] sm:$0xff]  ;;  %v139_v38 = vld [vmem:[#allocation5 + $0x60] sm:$0xff] }
  0x2d   :  { %335 = vmatprep.subr.bf16.mxu0 %v334_v7  ;;  %366 = vmatprep.subr.bf16.mxu1 %v334_v7  ;;  %v354_v37 = vpack.c.bf16 %v138_v36, %v137_v35  ;;  %v140_v39 = vld [vmem:[#allocation5 + $0x68] sm:$0xff]  ;;  %v141_v41 = vld [vmem:[#allocation5 + $0x70] sm:$0xff]  ;;  %v142_v42 = vld [vmem:[#allocation5 + $0x78] sm:$0xff] }
  0x2e   :  { %337 = vmatpush3.bf16.msra.mxu0 %v334_v7  ;;  %374 = vmatpush3.bf16.msra.mxu1 %v334_v7  ;;  %v358_v40 = vpack.c.bf16 %v140_v39, %v139_v38  ;;  %v362_v43 = vpack.c.bf16 %v142_v42, %v141_v41  ;;  %v273_v57 = vld [vmem:[%s623_s1] ss:$0 sm:$0xff]  ;;  %s496_s1 = smov [#allocation8]  }
  0x2f   :  { %339 = vmatprep.subr.bf16.mxu0 %v338_v9  ;;  %367 = vmatprep.subr.bf16.mxu1 %v338_v9  ;;  %v274_v59 = vld [vmem:[%s624_s2] ss:$0 sm:$0xff]  ;;  %s256_s2 = sshll.u32 %s496_s1, 4  ;;  %s257_s2 = int_to_ptr.vmem [resolvable:$true] %s256_s2 }
  0x30   :  { %s440_s25 = scalar_lea.vmem %s257_s2, 512  ;;  %p445_p3 = scmp.lt.s32.totalorder %s257_s2, %s257_s2 }
  0x31   :  { %p441_p2 = scmp.ne.s32.totalorder %s257_s2, %s440_s25  ;;  %p446_p4 = scmp.lt.s32.totalorder %s440_s25, %s440_s25 }
  0x32   :  { %341 = vmatpush3.bf16.msra.mxu0 %v338_v9  ;;  %375 = vmatpush3.bf16.msra.mxu1 %v338_v9 }
  0x33   :  { %343 = vmatprep.subr.bf16.mxu0 %v342_v28  ;;  %368 = vmatprep.subr.bf16.mxu1 %v342_v28  ;;  %p447_p5 = por %p446_p4, %p445_p3 }
  0x35   :  { %p448_p6 = pnand %p447_p5, %p441_p2 }
  0x36   :  { %345 = vmatpush3.bf16.msra.mxu0 %v342_v28  ;;  %376 = vmatpush3.bf16.msra.mxu1 %v342_v28 }
  0x37   :  { %347 = vmatprep.subr.bf16.mxu0 %v346_v31  ;;  %369 = vmatprep.subr.bf16.mxu1 %v346_v31 }
  0x3a   :  { %349 = vmatpush3.bf16.msra.mxu0 %v346_v31  ;;  %377 = vmatpush3.bf16.msra.mxu1 %v346_v31 }
  0x3b   :  { %351 = vmatprep.subr.bf16.mxu0 %v350_v34  ;;  %370 = vmatprep.subr.bf16.mxu1 %v350_v34 }
  0x3e   :  { %353 = vmatpush3.bf16.msra.mxu0 %v350_v34  ;;  %378 = vmatpush3.bf16.msra.mxu1 %v350_v34 }
  0x3f   :  { %355 = vmatprep.subr.bf16.mxu0 %v354_v37  ;;  %371 = vmatprep.subr.bf16.mxu1 %v354_v37 }
  0x42   :  { %357 = vmatpush3.bf16.msra.mxu0 %v354_v37  ;;  %379 = vmatpush3.bf16.msra.mxu1 %v354_v37 }
  0x43   :  { %359 = vmatprep.subr.bf16.mxu0 %v358_v40  ;;  %372 = vmatprep.subr.bf16.mxu1 %v358_v40 }
  0x46   :  { %361 = vmatpush3.bf16.msra.mxu0 %v358_v40  ;;  %380 = vmatpush3.bf16.msra.mxu1 %v358_v40 }
  0x47   :  { %363 = vmatprep.subr.bf16.mxu0 %v362_v43  ;;  %373 = vmatprep.subr.bf16.mxu1 %v362_v43 }
  0x4a   :  { %365 = vmatpush3.bf16.msra.mxu0 %v362_v43  ;;  %381 = vmatpush3.bf16.msra.mxu1 %v362_v43 }
  0xb5   :  { %v57_v10 = vpop.xlane.xlu0 %56  ;;  %v59_v11 = vpop.xlane.xlu1 %58 }
  0xb6   :  { %v65_v12 = vmul.f32 0.0078125, %v57_v10  ;;  %v66_v13 = vmul.f32 0.0078125, %v59_v11 }
  0xb8   :  { %v563_v14 = vsub.f32 %v52_v0, %v65_v12  ;;  %v565_v15 = vsub.f32 %v53_v1, %v66_v13 }
  0xb9   :  { %v61_v16 = vpop.xlane.xlu0 %60  ;;  %v63_v17 = vpop.xlane.xlu1 %62 }
  0xba   :  { %v67_v18 = vmul.f32 0.0078125, %v61_v16  ;;  %v73_v19 = vmul.f32 %v563_v14, %v563_v14  ;;  %v68_v20 = vmul.f32 0.0078125, %v63_v17  ;;  %v74_v23 = vmul.f32 %v565_v15, %v565_v15 }
  0xbc   :  { %v569_v21 = vsub.f32 %v54_v2, %v67_v18  ;;  %77 = vadd.xlane.f32.xlu0 %v73_v19  ;;  %v571_v22 = vsub.f32 %v55_v3, %v68_v20 }
  0xbe   :  { %v75_v24 = vmul.f32 %v569_v21, %v569_v21  ;;  %v76_v25 = vmul.f32 %v571_v22, %v571_v22 }
  0xc0   :  { %79 = vadd.xlane.f32.xlu0 %v74_v23  ;;  %81 = vadd.xlane.f32.xlu1 %v75_v24 }
  0xc4   :  { %83 = vadd.xlane.f32.xlu1 %v76_v25 }
 0x149   :  { %v78_v44 = vpop.xlane.xlu0 %77 }
 0x14a   :  { %v85_v45 = vmul.f32 0.0078125, %v78_v44 }
 0x14c   :  { %v89_v46 = vadd.f32 1e-05, %v85_v45 }
 0x14d   :  { %v82_v47 = vpop.xlane.xlu1 %81  ;;  %v80_v48 = vpop.xlane.xlu0 %79 }
 0x14e   :  { %388 = vrsqrt.f32 %v89_v46  ;;  %v87_v49 = vmul.f32 0.0078125, %v82_v47  ;;  %v86_v50 = vmul.f32 0.0078125, %v80_v48 }
 0x150   :  { %v91_v51 = vadd.f32 1e-05, %v87_v49  ;;  %v90_v52 = vadd.f32 1e-05, %v86_v50 }
 0x151   :  { %v84_v53 = vpop.xlane.xlu1 %83 }
 0x152   :  { %390 = vrsqrt.f32 %v91_v51  ;;  %v88_v54 = vmul.f32 0.0078125, %v84_v53 }
 0x153   :  { %392 = vrsqrt.f32 %v90_v52 }
 0x154   :  { %v92_v55 = vadd.f32 1e-05, %v88_v54 }
 0x156   :  { %394 = vrsqrt.f32 %v92_v55 }
 0x158   :  { %v389_v56 = vpop.eup %388 }
 0x159   :  { %v97_v58 = vmul.f32 %v389_v56, %v563_v14 }
 0x15b   :  { %v108_v60 = vmul.f32 %v273_v57, %v97_v58 }
 0x15c   :  { %v391_v61 = vpop.eup %390 }
 0x15d   :  { %v393_v62 = vpop.eup %392  ;;  %v119_v63 = vadd.f32 %v274_v59, %v108_v60  ;;  %v99_v0 = vmul.f32 %v391_v61, %v569_v21 }
 0x15e   :  { %v98_v1 = vmul.f32 %v393_v62, %v565_v15 }
 0x15f   :  { %123 = vst [vmem:[#allocation8] sm:$0xff] %v119_v63  ;;  %328 = vmatprep.mubr.f32.mxu0 %v119_v63  ;;  %v110_v2 = vmul.f32 %v273_v57, %v99_v0 }
 0x160   :  { %v395_v3 = vpop.eup %394  ;;  %v109_v4 = vmul.f32 %v273_v57, %v98_v1 }
 0x161   :  { %v121_v5 = vadd.f32 %v274_v59, %v110_v2  ;;  %v100_v6 = vmul.f32 %v395_v3, %v571_v22 }
 0x162   :  { %v120_v7 = vadd.f32 %v274_v59, %v109_v4 }
 0x163   :  { %125 = vst [vmem:[#allocation8 + $0x10] sm:$0xff] %v121_v5  ;;  %331 = vmatprep.mubr.f32.mxu1 %v121_v5  ;;  %v111_v8 = vmul.f32 %v273_v57, %v100_v6 }
 0x164   :  { %124 = vst [vmem:[#allocation8 + $0x8] sm:$0xff] %v120_v7  ;;  %329 = vmatmul.mubr.f32.vlgmr.msra.gmra.mrb[0].mxu0 %v120_v7 }
 0x165   :  { %v122_v9 = vadd.f32 %v274_v59, %v111_v8 }
 0x167   :  { %126 = vst [vmem:[#allocation8 + $0x18] sm:$0xff] %v122_v9  ;;  %332 = vmatmul.mubr.f32.vlgmr.msra.gmra.mrb[0].mxu1 %v122_v9 }
 0x168   :  { %451 = shalt.err (!%p448_p6)
}
 0x169   :  { %s452_s28 = scalar_lea.hbm %s628_s6, 512 }
 0x16a   :  { %p453_p7 = scmp.ne.s32.totalorder %s628_s6, %s452_s28  ;;  %p456_p8 = scmp.lt.u32.totalorder %s452_s28, %s628_s6 }
 0x16c   :  { %p458_p9 = pnand %p456_p8, %p453_p7 }
 0x16e   :  { %461 = shalt.err (!%p458_p9)
}
 0x16f   :  { %262 = dma.vmem_to_hbm [thread:$0]  %s257_s2, 512, %s628_s6, [#allocation9], %s493_s7, %s493_s7, %s494_s8  }
 0x170   :  { %v275_v10 = vld [vmem:[%s626_s4] ss:$0 sm:$0xff]  ;;  %s497_s15 = smov [#allocation7]  }
 0x171   :  { %s244_s16 = sshll.u32 %s497_s15, 4  ;;  %s245_s16 = int_to_ptr.vmem [resolvable:$true] %s244_s16 }
 0x172   :  { %s462_s6 = scalar_lea.vmem %s245_s16, 512  ;;  %p467_p11 = scmp.lt.s32.totalorder %s245_s16, %s245_s16 }
 0x173   :  { %p463_p10 = scmp.ne.s32.totalorder %s245_s16, %s462_s6  ;;  %p468_p12 = scmp.lt.s32.totalorder %s462_s6, %s462_s6 }
 0x175   :  { %p469_p13 = por %p468_p12, %p467_p11 }
 0x177   :  { %p470_p0 = pnand %p469_p13, %p463_p10 }
 0x237   :  { %v330_v11 = vpop.f32.mrb[0].mxu0 }
 0x238   :  { %v222_v12 = vadd.f32 %v330_v11, %v275_v10  ;;  %v216_v13 = vpop.f32.mrb[1].mxu0 }
 0x239   :  { %v217_v14 = vadd.f32 %v275_v10, %v216_v13 }
 0x23a   :  { %236 = vst [vmem:[#allocation7 + $0x8] sm:$0xff] %v222_v12  ;;  %v333_v15 = vpop.f32.mrb[0].mxu1 }
 0x23b   :  { %235 = vst [vmem:[#allocation7] sm:$0xff] %v217_v14  ;;  %v232_v16 = vadd.f32 %v333_v15, %v275_v10  ;;  %v226_v17 = vpop.f32.mrb[1].mxu1 }
 0x23c   :  { %v227_v18 = vadd.f32 %v275_v10, %v226_v17 }
 0x23d   :  { %238 = vst [vmem:[#allocation7 + $0x18] sm:$0xff] %v232_v16 }
 0x23e   :  { %237 = vst [vmem:[#allocation7 + $0x10] sm:$0xff] %v227_v18 }
 0x23f   :  { %473 = shalt.err (!%p470_p0)
}
 0x240   :  { %s474_s18 = scalar_lea.hbm %s627_s5, 512 }
 0x241   :  { %p475_p1 = scmp.ne.s32.totalorder %s627_s5, %s474_s18  ;;  %p478_p2 = scmp.lt.u32.totalorder %s474_s18, %s627_s5 }
 0x243   :  { %p480_p3 = pnand %p478_p2, %p475_p1 }
 0x245   :  { %483 = shalt.err (!%p480_p3)
}
 0x246   :  { %250 = dma.vmem_to_hbm [thread:$0]  %s245_s16, 512, %s627_s5, [#allocation4], %s493_s7, %s493_s7, %s494_s8  }
 0x247   :  { %488 = dma.done.wait [#allocation4], 512  }
 0x248   :  { %489 = vsyncadd [#allocation4], 4294966784 }
 0x249   :  { %490 = dma.done.wait [#allocation9], 512  }
 0x24a   :  { %491 = vsyncadd [#allocation9], 4294966784 }
 0x24b   :  { %269 = vsyncpa [#allocation3], 1 }
 0x24c   :  { %270 = vsyncpa [#allocation6], 1 }
 0x24d   :  { %271 = vsyncpa [#allocation4], 1 }
 0x24e   :  { %272 = vsyncpa [#allocation9], 1 }

</bundles_post_ra>
